<compile_context>
chip_gen: v7x
topology: tpu7x:2x2x1
jax: 0.10.0
libtpu: 0.0.40
codegen_flags: <defaults>
</compile_context>

<pallas_src>
import functools

import jax
import jax.numpy as jnp
from jax.experimental import pallas as pl
from jax.experimental.pallas import tpu as pltpu


def _embed_comp_kernel(x_ref, w_ref, b_ref, o_ref):
    # Cast x to bf16 in-kernel (hides under DMA slack; avoids a separate XLA
    # cast pass over x in HBM).  Weight arrives pre-transposed as (K, N) bf16.
    x_bf = x_ref[...].astype(jnp.bfloat16)
    y = jax.lax.dot_general(
        x_bf,
        w_ref[...],
        dimension_numbers=(((1,), (0,)), ((), ())),   # (tb,K) @ (K,N) -> (tb,N)
        preferred_element_type=jnp.float32,           # f32 MXU accumulation
    )
    # f32 bias add, then store bf16 (halves the dominant output write traffic).
    o_ref[...] = (y + b_ref[...]).astype(o_ref.dtype)


def _choose_batch_tile(B, max_block):
    """Large tiles amortize per-step overhead; >=2 steps keeps both v7x TCs busy."""
    if B <= 16:
        return B                                   # tiny batch: one full block
    tb = min(max_block, pl.cdiv(B, 2))             # at least 2 parallel grid steps
    tb = min(B, ((tb + 15) // 16) * 16)            # bf16-sublane-friendly multiple of 16
    return tb


@functools.partial(jax.jit, static_argnames=("md", "max_block_b"))
def embed_comp_forward(x, weight, bias, md, max_block_b=2048):
    """x: (B, insize); weight: (outsize, insize) [PyTorch layout]; bias: (outsize,)."""
    B, insize = x.shape
    outsize = weight.shape[0]

    # One-off weight transpose fused with the bf16 cast (grid-invariant block,
    # arrives in canonical (K, N) layout -> no in-kernel re-layout work).
    w_bf = weight.T.astype(jnp.bfloat16)            # (insize, outsize)
    b2d = bias.astype(jnp.float32).reshape(1, outsize)

    tb = _choose_batch_tile(B, max_block_b)
    grid = (pl.cdiv(B, tb),)

    # Real cost so XLA's scheduler can overlap this tiny custom call.
    cost = pl.CostEstimate(
        flops=2 * B * insize * outsize,
        transcendentals=0,
        bytes_accessed=(B * insize * x.dtype.itemsize      # x read (f32)
                        + insize * outsize * 2              # W (bf16)
                        + outsize * 4                       # bias (f32)
                        + B * outsize * 2),                 # output (bf16)
    )

    # Double-buffered VMEM footprint estimate; only raise the limit if needed.
    vmem_est = (2 * (tb * insize * x.dtype.itemsize + tb * outsize * 2)
                + insize * outsize * 2 + outsize * 4 + (1 << 20))
    cp_kwargs = dict(dimension_semantics=("parallel",))     # shards over v7x's 2 TCs
    if vmem_est > 24 * (1 << 20):
        cp_kwargs["vmem_limit_bytes"] = int(min(vmem_est * 2, 100 * (1 << 20)))

    lin = pl.pallas_call(
        _embed_comp_kernel,
        out_shape=jax.ShapeDtypeStruct((B, outsize), jnp.bfloat16),
        grid=grid,
        in_specs=[
            pl.BlockSpec((tb, insize), lambda i: (i, 0)),        # x tile (pipelined)
            pl.BlockSpec((insize, outsize), lambda i: (0, 0)),   # W^T   (grid-invariant)
            pl.BlockSpec((1, outsize), lambda i: (0, 0)),        # bias  (grid-invariant)
        ],
        out_specs=pl.BlockSpec((tb, outsize), lambda i: (i, 0)),  # lane-dense output
        compiler_params=pltpu.CompilerParams(**cp_kwargs),
        cost_estimate=cost,
    )(x, w_bf, b2d)

    # view(-1, outsize, 1, 1).repeat(1, 1, md, md)  ==  broadcast (pure glue).
    # Kept outside the kernel so the kernel's store stays lane-dense; under jit
    # this typically fuses into the consumer rather than materializing.
    # TODO(synk): if the downstream conv accepts NHWC, broadcast to
    # (B, md, md, outsize) instead so the 128 channels stay on lanes.
    out = jnp.broadcast_to(lin[:, :, None, None], (B, outsize, md, md))
    return out.astype(x.dtype)


if __name__ == "__main__":
    # Small shapes consistent with the module's forward.
    B = 8          # batch
    insize = 32    # embedding input size
    outsize = 128  # projected size
    md = 4         # spatial repeat factor

    key = jax.random.PRNGKey(0)
    kx, kw, kb = jax.random.split(key, 3)

    x = jax.random.normal(kx, (B, insize), dtype=jnp.float32)
    # Deterministic synthetic parameters (PyTorch nn.Linear shapes).
    weight = jax.random.normal(kw, (outsize, insize), dtype=jnp.float32) * 0.05
    bias = jax.random.normal(kb, (outsize,), dtype=jnp.float32) * 0.05

    out = jax.block_until_ready(embed_comp_forward(x, weight, bias, md))
    assert out.shape == (B, outsize, md, md)
    assert out.dtype == x.dtype

    # Loose check against the plain f32 reference (kernel uses bf16 inputs,
    # f32 accumulation, bf16 output store).
    ref_lin = x @ weight.T + bias
    ref = jnp.broadcast_to(ref_lin[:, :, None, None], (B, outsize, md, md))
    assert jnp.allclose(out, ref, atol=3e-2, rtol=3e-2)

    # Tight check against a reference that mirrors the kernel's bf16 rounding
    # of the inputs and of the stored result.
    xw = (x.astype(jnp.bfloat16).astype(jnp.float32)
          @ weight.astype(jnp.bfloat16).astype(jnp.float32).T)
    ref_lin_bf = (xw + bias).astype(jnp.bfloat16).astype(jnp.float32)
    ref_bf = jnp.broadcast_to(ref_lin_bf[:, :, None, None], (B, outsize, md, md))
    assert jnp.allclose(out, ref_bf, atol=5e-3, rtol=5e-3)

    print("KERNEL_OK")
</pallas_src>

<mosaic_0001>
module attributes {stable_mosaic.version = 11 : i64} {
  func.func @_embed_comp_kernel(%arg0: i32, %arg1: memref<8x32xf32, #tpu.memory_space<vmem>>, %arg2: memref<32x128xbf16, #tpu.memory_space<vmem>>, %arg3: memref<1x128xf32, #tpu.memory_space<vmem>>, %arg4: memref<8x128xbf16, #tpu.memory_space<vmem>>) attributes {dimension_semantics = [#tpu.dimension_semantics<parallel>], iteration_bounds = array<i64: 1>, scalar_prefetch = 0 : i64, scratch_operands = 0 : i64, tpu.core_type = #tpu.core_type<tc>, window_params = [{transform_indices = @transform_0, window_bounds = array<i64: 8, 32>}, {pipeline_mode = #tpu.pipeline_mode<synchronous>, transform_indices = @transform_1, window_bounds = array<i64: 32, 128>}, {pipeline_mode = #tpu.pipeline_mode<synchronous>, transform_indices = @transform_2, window_bounds = array<i64: 1, 128>}, {transform_indices = @transform_3, window_bounds = array<i64: 8, 128>}]} {
    %c0 = arith.constant 0 : index
    %c0_0 = arith.constant 0 : index
    %0 = vector.load %arg1[%c0, %c0_0] : memref<8x32xf32, #tpu.memory_space<vmem>>, vector<8x32xf32>
    %1 = arith.truncf %0 : vector<8x32xf32> to vector<8x32xbf16>
    %c0_1 = arith.constant 0 : index
    %c0_2 = arith.constant 0 : index
    %2 = vector.load %arg2[%c0_1, %c0_2] : memref<32x128xbf16, #tpu.memory_space<vmem>>, vector<32x128xbf16>
    %cst = arith.constant dense<0.000000e+00> : vector<8x128xf32>
    %3 = tpu.matmul %1, %2, %cst {dimension_numbers = #tpu.dot_dimension_numbers<[1], [0], [0], [1], [0, 0, 1, 1], [], []>} : vector<8x32xbf16>, vector<32x128xbf16>, vector<8x128xf32> -> vector<8x128xf32>
    %c0_3 = arith.constant 0 : index
    %c0_4 = arith.constant 0 : index
    %4 = vector.load %arg3[%c0_3, %c0_4] : memref<1x128xf32, #tpu.memory_space<vmem>>, vector<1x128xf32>
    %5 = vector.broadcast %4 : vector<1x128xf32> to vector<8x128xf32>
    %6 = arith.addf %3, %5 : vector<8x128xf32>
    %7 = arith.truncf %6 : vector<8x128xf32> to vector<8x128xbf16>
    %c0_5 = arith.constant 0 : index
    %c0_6 = arith.constant 0 : index
    %8 = vector.load %arg4[%c0_5, %c0_6] : memref<8x128xbf16, #tpu.memory_space<vmem>>, vector<8x128xbf16>
    tpu.vector_store %arg4[%c0_5, %c0_6], %7 {strides = array<i32>} : memref<8x128xbf16, #tpu.memory_space<vmem>>, vector<8x128xbf16>,
    return
  }
  func.func @transform_0(%arg0: i32) -> (i32, i32) {
    %c0_i32 = arith.constant 0 : i32
    %c0_i32_0 = arith.constant 0 : i32
    return %arg0, %c0_i32 : i32, i32
  }
  func.func @transform_1(%arg0: i32) -> (i32, i32) {
    %c0_i32 = arith.constant 0 : i32
    %c0_i32_0 = arith.constant 0 : i32
    %c0_i32_1 = arith.constant 0 : i32
    return %c0_i32, %c0_i32_0 : i32, i32
  }
  func.func @transform_2(%arg0: i32) -> (i32, i32) {
    %c0_i32 = arith.constant 0 : i32
    %c0_i32_0 = arith.constant 0 : i32
    %c0_i32_1 = arith.constant 0 : i32
    return %c0_i32, %c0_i32_0 : i32, i32
  }
  func.func @transform_3(%arg0: i32) -> (i32, i32) {
    %c0_i32 = arith.constant 0 : i32
    %c0_i32_0 = arith.constant 0 : i32
    return %arg0, %c0_i32 : i32, i32
  }
}

</mosaic_0001>

<bundles_post_ra>
// kernel: embed_comp_forward.1
= control target key start
LH: loop header
LB: loop body
LE: loop exit
PB: predicated region body
PF: predicated region fallthrough
CT: control target
= control target key end

     0   :  { %v109_v0 = vmov 0.0   ;;  %vm110_vm0 = vmmov 0   ;;  %vm40_vm1 = vcmask 261120   ;;  %s146_s1 = inlined_call_operand.vmem [shape: bf16[32,128], index: 1, kind: input, shape index: {}]   ;;  %s147_s0 = inlined_call_operand.vmem [shape: f32[8,32], index: 0, kind: input, shape index: {}]   ;;  %s148_s2 = inlined_call_operand.vmem [shape: f32[1,128], index: 2, kind: input, shape index: {}]   ;;  %s149_s3 = inlined_call_operand.vmem [shape: bf16[8,128], index: 3, kind: output, shape index: {}]  }
   0x1   :  { %97 = vmatprep.subr.bf16.mxu0 %v109_v0  ;;  %v107_v1 = vld [vmem:[%s146_s1] sm:$0xff]   ;;  %101 = vmatprep.mubr.msk.bf16.mxu0 %vm110_vm0, %v109_v0  ;;  %v108_v2 = vld [vmem:[%s146_s1 + $0x8] sm:$0xff]  }
   0x2   :  { %98 = vmatpush3.bf16.msra.mxu0 %v107_v1  ;;  %v15_v3 = vld [vmem:[%s147_s0] sm:$0xff] }
   0x3   :  { %99 = vmatprep.subr.bf16.mxu0 %v109_v0  ;;  %v16_v4 = vpack.c.bf16 %v15_v3, %v15_v3  ;;  %v90_v5 = vld [vmem:[%s148_s2] ss:$0 sm:$0xff] }
   0x6   :  { %100 = vmatpush3.bf16.msra.mxu0 %v108_v2 }
   0x9   :  { %102 = vmatmul.mubr.msk.bf16.vlgmr.msra.gmra.mrb[0].mxu0 %vm40_vm1, %v16_v4 }
  0xdc   :  { %v78_v6 = vpop.f32.mrb[0].mxu0 }
  0xdd   :  { %v79_v7 = vadd.f32 %v90_v5, %v78_v6  ;;  %v103_v8 = vpop.f32.mrb[1].mxu0 }
  0xde   :  { %v81_v9 = vpop.f32.mrb[2].mxu0 }
  0xdf   :  { %v84_v10 = vpack.c.bf16 %v79_v7, %v79_v7  ;;  %v104_v11 = vpop.f32.mrb[3].mxu0 }
  0xe1   :  { %85 = vst [vmem:[%s149_s3] sm:$0xf] %v84_v10 }

</bundles_post_ra>
